<compile_context>
chip_gen: v5e
topology: v5e:2x2
jax: 0.10.0
libtpu: 0.0.40
codegen_flags: <defaults>
</compile_context>

<pallas_src>
import jax
import jax.numpy as jnp
from jax.experimental import pallas as pl
from jax.experimental.pallas import tpu as pltpu


def _round_up(n, m):
    return ((n + m - 1) // m) * m


def mlp_kernel(x_ref, w1_ref, b1_ref, w2_ref, b2_ref, w3_ref, b3_ref, o_ref):
    # fc1 + ReLU : (TB,800) @ (800,200) + (1,200)   [bf16 inputs, f32 accumulate]
    x_bf = x_ref[...].astype(jnp.bfloat16)
    h1 = jnp.dot(x_bf, w1_ref[...], preferred_element_type=jnp.float32)
    h1 = jnp.maximum(h1 + b1_ref[...], 0.0)
    # fc2 + ReLU : (TB,200) @ (200,100) + (1,100)
    h2 = jnp.dot(h1.astype(jnp.bfloat16), w2_ref[...],
                 preferred_element_type=jnp.float32)
    h2 = jnp.maximum(h2 + b2_ref[...], 0.0)
    # dropout(p=0.6): identity at inference time (module eval semantics).
    # TODO(synk): training-mode dropout with pltpu.prng_random_bits if needed.
    # fc4 (out_features=1) + sigmoid, done as VPU multiply + lane reduction
    # instead of a wasteful N=1 MXU pass.  w3_ref is the (1,100) weight row.
    logits = jnp.sum(h2 * w3_ref[...], axis=-1, keepdims=True) + b3_ref[...]
    o_ref[...] = jax.nn.sigmoid(logits)


def mlp_forward(x, w1, b1, w2, b2, w3, b3, *, tile_b=512):
    """x: (B, 800) f32.  Weights/biases in f32, PyTorch-equivalent (in,out) layout."""
    B, F_in = x.shape
    # Tile the batch axis: round tiny batches up to a sublane multiple, cap at tile_b.
    tb = min(tile_b, max(8, _round_up(B, 8)))
    Bp = _round_up(B, tb)
    xp = jnp.pad(x, ((0, Bp - B), (0, 0))) if Bp != B else x

    # bf16 weights for the two big matmuls (halves the dominant weight DMA);
    # the tiny fc4 row stays f32 and is used on the VPU.
    w1_bf = w1.astype(jnp.bfloat16)
    w2_bf = w2.astype(jnp.bfloat16)
    w3_row = w3.reshape(1, -1).astype(jnp.float32)   # (1, 100)

    # Weights/biases: full-array blocks with a constant index_map -> DMA'd once,
    # kept resident in VMEM while x tiles stream through.
    resident = lambda a: pl.BlockSpec(a.shape, lambda i: (0,) * a.ndim)

    out = pl.pallas_call(
        mlp_kernel,
        out_shape=jax.ShapeDtypeStruct((Bp, 1), jnp.float32),
        grid=(Bp // tb,),
        in_specs=[
            pl.BlockSpec((tb, F_in), lambda i: (i, 0)),   # x: streamed per batch tile
            resident(w1_bf), resident(b1),
            resident(w2_bf), resident(b2),
            resident(w3_row), resident(b3),
        ],
        out_specs=pl.BlockSpec((tb, 1), lambda i: (i, 0)),
        compiler_params=pltpu.CompilerParams(
            dimension_semantics=("parallel",),            # shard batch tiles over TCs
        ),
    )(xp, w1_bf, b1, w2_bf, b2, w3_row, b3)
    return out[:B]


def init_params(key):
    # Deterministic init mimicking PyTorch's default U(-1/sqrt(fan_in), 1/sqrt(fan_in))
    ks = jax.random.split(key, 6)

    def lin(kw, kb, fan_in, fan_out):
        bound = 1.0 / jnp.sqrt(fan_in)
        w = jax.random.uniform(kw, (fan_in, fan_out), jnp.float32, -bound, bound)
        b = jax.random.uniform(kb, (1, fan_out), jnp.float32, -bound, bound)
        return w, b

    w1, b1 = lin(ks[0], ks[1], 800, 200)
    w2, b2 = lin(ks[2], ks[3], 200, 100)
    w3, b3 = lin(ks[4], ks[5], 100, 1)
    return w1, b1, w2, b2, w3, b3


def _reference(x, w1, b1, w2, b2, w3, b3):
    # Same precision recipe as the kernel (bf16 weights/activations into the
    # matmuls, f32 accumulation) so the comparison is tight.
    w1_bf = w1.astype(jnp.bfloat16)
    w2_bf = w2.astype(jnp.bfloat16)
    h1 = jnp.dot(x.astype(jnp.bfloat16), w1_bf, preferred_element_type=jnp.float32)
    h1 = jnp.maximum(h1 + b1, 0.0)
    h2 = jnp.dot(h1.astype(jnp.bfloat16), w2_bf, preferred_element_type=jnp.float32)
    h2 = jnp.maximum(h2 + b2, 0.0)
    return jax.nn.sigmoid(h2 @ w3 + b3)


if __name__ == "__main__":
    key = jax.random.PRNGKey(0)
    pkey, xkey = jax.random.split(key)
    w1, b1, w2, b2, w3, b3 = init_params(pkey)

    # Small batch (single tile, padded to sublane multiple).
    x = jax.random.normal(xkey, (8, 800), jnp.float32)
    out = jax.block_until_ready(mlp_forward(x, w1, b1, w2, b2, w3, b3))
    ref = _reference(x, w1, b1, w2, b2, w3, b3)
    assert out.shape == (8, 1)
    assert jnp.allclose(out, ref, atol=1e-3), "mismatch vs reference (small batch)"

    # Larger, non-tile-aligned batch exercising the multi-tile parallel grid
    # and the pad-and-slice tail handling.
    x2 = jax.random.normal(jax.random.PRNGKey(1), (200, 800), jnp.float32)
    out2 = jax.block_until_ready(mlp_forward(x2, w1, b1, w2, b2, w3, b3, tile_b=64))
    ref2 = _reference(x2, w1, b1, w2, b2, w3, b3)
    assert out2.shape == (200, 1)
    assert jnp.allclose(out2, ref2, atol=1e-3), "mismatch vs reference (tiled batch)"

    print("KERNEL_OK")
</pallas_src>

<mosaic_0001>
module attributes {stable_mosaic.version = 11 : i64} {
  func.func @mlp_kernel(%arg0: i32, %arg1: memref<8x800xf32, #tpu.memory_space<vmem>>, %arg2: memref<800x200xbf16, #tpu.memory_space<vmem>>, %arg3: memref<1x200xf32, #tpu.memory_space<vmem>>, %arg4: memref<200x100xbf16, #tpu.memory_space<vmem>>, %arg5: memref<1x100xf32, #tpu.memory_space<vmem>>, %arg6: memref<1x100xf32, #tpu.memory_space<vmem>>, %arg7: memref<1x1xf32, #tpu.memory_space<vmem>>, %arg8: memref<8x1xf32, #tpu.memory_space<vmem>>) attributes {dimension_semantics = [#tpu.dimension_semantics<parallel>], iteration_bounds = array<i64: 1>, scalar_prefetch = 0 : i64, scratch_operands = 0 : i64, tpu.core_type = #tpu.core_type<tc>, window_params = [{transform_indices = @transform_0, window_bounds = array<i64: 8, 800>}, {pipeline_mode = #tpu.pipeline_mode<synchronous>, transform_indices = @transform_1, window_bounds = array<i64: 800, 200>}, {pipeline_mode = #tpu.pipeline_mode<synchronous>, transform_indices = @transform_2, window_bounds = array<i64: 1, 200>}, {pipeline_mode = #tpu.pipeline_mode<synchronous>, transform_indices = @transform_3, window_bounds = array<i64: 200, 100>}, {pipeline_mode = #tpu.pipeline_mode<synchronous>, transform_indices = @transform_4, window_bounds = array<i64: 1, 100>}, {pipeline_mode = #tpu.pipeline_mode<synchronous>, transform_indices = @transform_5, window_bounds = array<i64: 1, 100>}, {pipeline_mode = #tpu.pipeline_mode<synchronous>, transform_indices = @transform_6, window_bounds = array<i64: 1, 1>}, {transform_indices = @transform_7, window_bounds = array<i64: 8, 1>}]} {
    %c0 = arith.constant 0 : index
    %c0_0 = arith.constant 0 : index
    %0 = vector.load %arg1[%c0, %c0_0] : memref<8x800xf32, #tpu.memory_space<vmem>>, vector<8x800xf32>
    %1 = arith.truncf %0 : vector<8x800xf32> to vector<8x800xbf16>
    %c0_1 = arith.constant 0 : index
    %c0_2 = arith.constant 0 : index
    %2 = vector.load %arg2[%c0_1, %c0_2] : memref<800x200xbf16, #tpu.memory_space<vmem>>, vector<800x200xbf16>
    %cst = arith.constant dense<0.000000e+00> : vector<8x200xf32>
    %3 = tpu.matmul %1, %2, %cst {dimension_numbers = #tpu.dot_dimension_numbers<[1], [0], [0], [1], [0, 0, 1, 1], [], []>} : vector<8x800xbf16>, vector<800x200xbf16>, vector<8x200xf32> -> vector<8x200xf32>
    %c0_3 = arith.constant 0 : index
    %c0_4 = arith.constant 0 : index
    %4 = vector.load %arg3[%c0_3, %c0_4] : memref<1x200xf32, #tpu.memory_space<vmem>>, vector<1x200xf32>
    %5 = vector.broadcast %4 : vector<1x200xf32> to vector<8x200xf32>
    %6 = arith.addf %3, %5 : vector<8x200xf32>
    %cst_5 = arith.constant 0.000000e+00 : f32
    %7 = vector.broadcast %cst_5 : f32 to vector<8x200xf32>
    %8 = arith.maximumf %6, %7 : vector<8x200xf32>
    %9 = arith.truncf %8 : vector<8x200xf32> to vector<8x200xbf16>
    %c0_6 = arith.constant 0 : index
    %c0_7 = arith.constant 0 : index
    %10 = vector.load %arg4[%c0_6, %c0_7] : memref<200x100xbf16, #tpu.memory_space<vmem>>, vector<200x100xbf16>
    %cst_8 = arith.constant dense<0.000000e+00> : vector<8x100xf32>
    %11 = tpu.matmul %9, %10, %cst_8 {dimension_numbers = #tpu.dot_dimension_numbers<[1], [0], [0], [1], [0, 0, 1, 1], [], []>} : vector<8x200xbf16>, vector<200x100xbf16>, vector<8x100xf32> -> vector<8x100xf32>
    %c0_9 = arith.constant 0 : index
    %c0_10 = arith.constant 0 : index
    %12 = vector.load %arg5[%c0_9, %c0_10] : memref<1x100xf32, #tpu.memory_space<vmem>>, vector<1x100xf32>
    %13 = vector.broadcast %12 : vector<1x100xf32> to vector<8x100xf32>
    %14 = arith.addf %11, %13 : vector<8x100xf32>
    %cst_11 = arith.constant 0.000000e+00 : f32
    %15 = vector.broadcast %cst_11 : f32 to vector<8x100xf32>
    %16 = arith.maximumf %14, %15 : vector<8x100xf32>
    %c0_12 = arith.constant 0 : index
    %c0_13 = arith.constant 0 : index
    %17 = vector.load %arg6[%c0_12, %c0_13] : memref<1x100xf32, #tpu.memory_space<vmem>>, vector<1x100xf32>
    %18 = vector.broadcast %17 : vector<1x100xf32> to vector<8x100xf32>
    %19 = arith.mulf %16, %18 : vector<8x100xf32>
    %cst_14 = arith.constant dense<0.000000e+00> : vector<8xf32>
    %20 = vector.multi_reduction <add>, %19, %cst_14 [1] : vector<8x100xf32> to vector<8xf32>
    %21 = vector.shape_cast %20 : vector<8xf32> to vector<8x1xf32>
    %c0_15 = arith.constant 0 : index
    %c0_16 = arith.constant 0 : index
    %22 = vector.load %arg7[%c0_15, %c0_16] : memref<1x1xf32, #tpu.memory_space<vmem>>, vector<1x1xf32>
    %23 = vector.broadcast %22 : vector<1x1xf32> to vector<8x1xf32>
    %24 = arith.addf %21, %23 : vector<8x1xf32>
    %25 = arith.negf %24 : vector<8x1xf32>
    %26 = math.exp %25 : vector<8x1xf32>
    %cst_17 = arith.constant 1.000000e+00 : f32
    %27 = vector.broadcast %cst_17 : f32 to vector<8x1xf32>
    %28 = arith.addf %27, %26 : vector<8x1xf32>
    %29 = arith.divf %27, %28 : vector<8x1xf32>
    %c0_18 = arith.constant 0 : index
    %c0_19 = arith.constant 0 : index
    %30 = vector.load %arg8[%c0_18, %c0_19] : memref<8x1xf32, #tpu.memory_space<vmem>>, vector<8x1xf32>
    tpu.vector_store %arg8[%c0_18, %c0_19], %29 {strides = array<i32>} : memref<8x1xf32, #tpu.memory_space<vmem>>, vector<8x1xf32>,
    return
  }
  func.func @transform_0(%arg0: i32) -> (i32, i32) {
    %c0_i32 = arith.constant 0 : i32
    %c0_i32_0 = arith.constant 0 : i32
    return %arg0, %c0_i32 : i32, i32
  }
  func.func @transform_1(%arg0: i32) -> (i32, i32) {
    %c0_i32 = arith.constant 0 : i32
    %c0_i32_0 = arith.constant 0 : i32
    %c0_i32_1 = arith.constant 0 : i32
    return %c0_i32, %c0_i32_0 : i32, i32
  }
  func.func @transform_2(%arg0: i32) -> (i32, i32) {
    %c0_i32 = arith.constant 0 : i32
    %c0_i32_0 = arith.constant 0 : i32
    %c0_i32_1 = arith.constant 0 : i32
    return %c0_i32, %c0_i32_0 : i32, i32
  }
  func.func @transform_3(%arg0: i32) -> (i32, i32) {
    %c0_i32 = arith.constant 0 : i32
    %c0_i32_0 = arith.constant 0 : i32
    %c0_i32_1 = arith.constant 0 : i32
    return %c0_i32, %c0_i32_0 : i32, i32
  }
  func.func @transform_4(%arg0: i32) -> (i32, i32) {
    %c0_i32 = arith.constant 0 : i32
    %c0_i32_0 = arith.constant 0 : i32
    %c0_i32_1 = arith.constant 0 : i32
    return %c0_i32, %c0_i32_0 : i32, i32
  }
  func.func @transform_5(%arg0: i32) -> (i32, i32) {
    %c0_i32 = arith.constant 0 : i32
    %c0_i32_0 = arith.constant 0 : i32
    %c0_i32_1 = arith.constant 0 : i32
    return %c0_i32, %c0_i32_0 : i32, i32
  }
  func.func @transform_6(%arg0: i32) -> (i32, i32) {
    %c0_i32 = arith.constant 0 : i32
    %c0_i32_0 = arith.constant 0 : i32
    %c0_i32_1 = arith.constant 0 : i32
    return %c0_i32, %c0_i32_0 : i32, i32
  }
  func.func @transform_7(%arg0: i32) -> (i32, i32) {
    %c0_i32 = arith.constant 0 : i32
    %c0_i32_0 = arith.constant 0 : i32
    return %arg0, %c0_i32 : i32, i32
  }
}

</mosaic_0001>

<bundles_post_ra>
// kernel: tpu_custom_call.1
= control target key start
LH: loop header
LB: loop body
LE: loop exit
PB: predicated region body
PF: predicated region fallthrough
CT: control target
= control target key end

     0   :  { %vm649_vm0 = vcmask 261120   ;;  %vm947_vm1 = vcmask 1043456   ;;  %vm943_vm2 = vcmask 588800   ;;  %vm983_vm3 = vcmask 818176   ;;  %s2333_s1 = inlined_call_operand.vmem [shape: bf16[800,200], index: 1, kind: input, shape index: {}]   ;;  %s2334_s0 = inlined_call_operand.vmem [shape: f32[8,800], index: 0, kind: input, shape index: {}]   ;;  %s2335_s4 = inlined_call_operand.vmem [shape: f32[1,100], index: 4, kind: input, shape index: {}]   ;;  %s2336_s3 = inlined_call_operand.vmem [shape: bf16[200,100], index: 3, kind: input, shape index: {}]   ;;  %s2337_s2 = inlined_call_operand.vmem [shape: f32[1,200], index: 2, kind: input, shape index: {}]   ;;  %s2338_s5 = inlined_call_operand.vmem [shape: f32[1,100], index: 5, kind: input, shape index: {}]   ;;  %s2339_s6 = inlined_call_operand.<no memory space> [shape: f32[1,1], index: 6, kind: input, shape index: {}]   ;;  %s2340_s7 = inlined_call_operand.vmem [shape: f32[8,1], index: 7, kind: output, shape index: {}]  }
   0x1   :  { %v1075_v0 = vld [vmem:[%s2333_s1 + $0x70] sm:$0xf]  ;;  %v1484_v1 = vld [vmem:[%s2333_s1 + $0x74] sm:$0xf0]  ;;  %v1067_v11 = vld [vmem:[%s2333_s1 + $0x60] sm:$0xf] }
   0x2   :  { %v1203_v2 = vld [vmem:[%s2333_s1 + $0x170] sm:$0xf]  ;;  %v1076_v3 = vor.u32 %v1484_v1, %v1075_v0  ;;  %v1516_v4 = vld [vmem:[%s2333_s1 + $0x174] sm:$0xf0]  ;;  %v1482_v13 = vld [vmem:[%s2333_s1 + $0x64] sm:$0xf0] }
   0x3   :  { %v1267_v5 = vld [vmem:[%s2333_s1 + $0x1f0] sm:$0xf]  ;;  %v1532_v6 = vld [vmem:[%s2333_s1 + $0x1f4] sm:$0xf0]  ;;  %v1204_v7 = vor.u32 %v1516_v4, %v1203_v2  ;;  %v1195_v14 = vld [vmem:[%s2333_s1 + $0x160] sm:$0xf]  ;;  %v1068_v16 = vor.u32 %v1482_v13, %v1067_v11 }
   0x4   :  { %v1268_v8 = vor.u32 %v1532_v6, %v1267_v5  ;;  %v1139_v9 = vld [vmem:[%s2333_s1 + $0xf0] sm:$0xf]  ;;  %v1500_v10 = vld [vmem:[%s2333_s1 + $0xf4] sm:$0xf0]  ;;  %653 = vmatpush.bf16.msra.mxu0 %v1076_v3  ;;  %v1514_v15 = vld [vmem:[%s2333_s1 + $0x164] sm:$0xf0] }
   0x5   :  { %v1140_v12 = vor.u32 %v1500_v10, %v1139_v9  ;;  %679 = vmatpush.bf16.msra.mxu2 %v1204_v7  ;;  %v1196_v17 = vor.u32 %v1514_v15, %v1195_v14  ;;  %v1259_v18 = vld [vmem:[%s2333_s1 + $0x1e0] sm:$0xf]  ;;  %v1530_v19 = vld [vmem:[%s2333_s1 + $0x1e4] sm:$0xf0]  ;;  %v1059_v23 = vld [vmem:[%s2333_s1 + $0x50] sm:$0xf] }
   0x6   :  { %692 = vmatpush.bf16.msra.mxu3 %v1268_v8  ;;  %v1131_v20 = vld [vmem:[%s2333_s1 + $0xe0] sm:$0xf]  ;;  %v1260_v21 = vor.u32 %v1530_v19, %v1259_v18  ;;  %v1498_v22 = vld [vmem:[%s2333_s1 + $0xe4] sm:$0xf0]  ;;  %v1480_v24 = vld [vmem:[%s2333_s1 + $0x54] sm:$0xf0] }
   0x7   :  { %666 = vmatpush.bf16.msra.mxu1 %v1140_v12  ;;  %v1132_v25 = vor.u32 %v1498_v22, %v1131_v20  ;;  %v1187_v26 = vld [vmem:[%s2333_s1 + $0x150] sm:$0xf]  ;;  %v1512_v27 = vld [vmem:[%s2333_s1 + $0x154] sm:$0xf0]  ;;  %v1060_v29 = vor.u32 %v1480_v24, %v1059_v23  ;;  %v1051_v35 = vld [vmem:[%s2333_s1 + $0x40] sm:$0xf] }
   0x8   :  { %v1251_v28 = vld [vmem:[%s2333_s1 + $0x1d0] sm:$0xf]  ;;  %654 = vmatpush.bf16.msra.mxu0 %v1068_v16  ;;  %v1528_v30 = vld [vmem:[%s2333_s1 + $0x1d4] sm:$0xf0]  ;;  %v1188_v33 = vor.u32 %v1512_v27, %v1187_v26  ;;  %v1478_v36 = vld [vmem:[%s2333_s1 + $0x44] sm:$0xf0] }
   0x9   :  { %v1123_v31 = vld [vmem:[%s2333_s1 + $0xd0] sm:$0xf]  ;;  %v1496_v32 = vld [vmem:[%s2333_s1 + $0xd4] sm:$0xf0]  ;;  %680 = vmatpush.bf16.msra.mxu2 %v1196_v17  ;;  %v1252_v34 = vor.u32 %v1528_v30, %v1251_v28  ;;  %v1179_v37 = vld [vmem:[%s2333_s1 + $0x140] sm:$0xf]  ;;  %v1052_v44 = vor.u32 %v1478_v36, %v1051_v35 }
   0xa   :  { %693 = vmatpush.bf16.msra.mxu3 %v1260_v21  ;;  %v1124_v38 = vor.u32 %v1496_v32, %v1123_v31  ;;  %v1510_v39 = vld [vmem:[%s2333_s1 + $0x144] sm:$0xf0]  ;;  %v1243_v40 = vld [vmem:[%s2333_s1 + $0x1c0] sm:$0xf]  ;;  %v1043_v47 = vld [vmem:[%s2333_s1 + $0x30] sm:$0xf] }
   0xb   :  { %667 = vmatpush.bf16.msra.mxu1 %v1132_v25  ;;  %v1526_v41 = vld [vmem:[%s2333_s1 + $0x1c4] sm:$0xf0]  ;;  %v1115_v42 = vld [vmem:[%s2333_s1 + $0xc0] sm:$0xf]  ;;  %v1180_v45 = vor.u32 %v1510_v39, %v1179_v37  ;;  %v1476_v48 = vld [vmem:[%s2333_s1 + $0x34] sm:$0xf0] }
   0xc   :  { %v1494_v43 = vld [vmem:[%s2333_s1 + $0xc4] sm:$0xf0]  ;;  %655 = vmatpush.bf16.msra.mxu0 %v1060_v29  ;;  %v1244_v46 = vor.u32 %v1526_v41, %v1243_v40  ;;  %v1171_v49 = vld [vmem:[%s2333_s1 + $0x130] sm:$0xf]  ;;  %v1508_v51 = vld [vmem:[%s2333_s1 + $0x134] sm:$0xf0]  ;;  %v1044_v56 = vor.u32 %v1476_v48, %v1043_v47 }
   0xd   :  { %681 = vmatpush.bf16.msra.mxu2 %v1188_v33  ;;  %v1116_v50 = vor.u32 %v1494_v43, %v1115_v42  ;;  %v1235_v52 = vld [vmem:[%s2333_s1 + $0x1b0] sm:$0xf]  ;;  %v1524_v53 = vld [vmem:[%s2333_s1 + $0x1b4] sm:$0xf0]  ;;  %v1172_v57 = vor.u32 %v1508_v51, %v1171_v49  ;;  %v1035_v59 = vld [vmem:[%s2333_s1 + $0x20] sm:$0xf] }
   0xe   :  { %694 = vmatpush.bf16.msra.mxu3 %v1252_v34  ;;  %v1107_v54 = vld [vmem:[%s2333_s1 + $0xb0] sm:$0xf]  ;;  %v1492_v55 = vld [vmem:[%s2333_s1 + $0xb4] sm:$0xf0]  ;;  %v1236_v58 = vor.u32 %v1524_v53, %v1235_v52  ;;  %v1474_v60 = vld [vmem:[%s2333_s1 + $0x24] sm:$0xf0] }
   0xf   :  { %668 = vmatpush.bf16.msra.mxu1 %v1124_v38  ;;  %v1163_v61 = vld [vmem:[%s2333_s1 + $0x120] sm:$0xf]  ;;  %v1108_v62 = vor.u32 %v1492_v55, %v1107_v54  ;;  %v1506_v63 = vld [vmem:[%s2333_s1 + $0x124] sm:$0xf0]  ;;  %v1036_v4 = vor.u32 %v1474_v60, %v1035_v59  ;;  %v1027_v7 = vld [vmem:[%s2333_s1 + $0x10] sm:$0xf] }
  0x10   :  { %656 = vmatpush.bf16.msra.mxu0 %v1052_v44  ;;  %v1227_v0 = vld [vmem:[%s2333_s1 + $0x1a0] sm:$0xf]  ;;  %v1522_v1 = vld [vmem:[%s2333_s1 + $0x1a4] sm:$0xf0]  ;;  %v1164_v5 = vor.u32 %v1506_v63, %v1163_v61  ;;  %v1472_v8 = vld [vmem:[%s2333_s1 + $0x14] sm:$0xf0] }
  0x11   :  { %682 = vmatpush.bf16.msra.mxu2 %v1180_v45  ;;  %v1099_v2 = vld [vmem:[%s2333_s1 + $0xa0] sm:$0xf]  ;;  %v1490_v3 = vld [vmem:[%s2333_s1 + $0xa4] sm:$0xf0]  ;;  %v1228_v6 = vor.u32 %v1522_v1, %v1227_v0  ;;  %v1155_v9 = vld [vmem:[%s2333_s1 + $0x110] sm:$0xf]  ;;  %v1028_v16 = vor.u32 %v1472_v8, %v1027_v7 }
  0x12   :  { %695 = vmatpush.bf16.msra.mxu3 %v1244_v46  ;;  %v1100_v10 = vor.u32 %v1490_v3, %v1099_v2  ;;  %v1504_v11 = vld [vmem:[%s2333_s1 + $0x114] sm:$0xf0]  ;;  %v1219_v12 = vld [vmem:[%s2333_s1 + $0x190] sm:$0xf]  ;;  %v1019_v17 = vld [vmem:[%s2333_s1] sm:$0xf] }
  0x13   :  { %669 = vmatpush.bf16.msra.mxu1 %v1116_v50  ;;  %v1520_v13 = vld [vmem:[%s2333_s1 + $0x194] sm:$0xf0]  ;;  %v1091_v14 = vld [vmem:[%s2333_s1 + $0x90] sm:$0xf]  ;;  %v1470_v18 = vld [vmem:[%s2333_s1 + $0x4] sm:$0xf0]  ;;  %v1156_v20 = vor.u32 %v1504_v11, %v1155_v9 }
  0x14   :  { %657 = vmatpush.bf16.msra.mxu0 %v1044_v56  ;;  %v1488_v15 = vld [vmem:[%s2333_s1 + $0x94] sm:$0xf0]  ;;  %v1147_v19 = vld [vmem:[%s2333_s1 + $0x100] sm:$0xf]  ;;  %v1220_v21 = vor.u32 %v1520_v13, %v1219_v12  ;;  %v1502_v22 = vld [vmem:[%s2333_s1 + $0x104] sm:$0xf0]  ;;  %v1020_v32 = vor.u32 %v1470_v18, %v1019_v17 }
  0x15   :  { %683 = vmatpush.bf16.msra.mxu2 %v1172_v57  ;;  %v1211_v23 = vld [vmem:[%s2333_s1 + $0x180] sm:$0xf]  ;;  %v1518_v24 = vld [vmem:[%s2333_s1 + $0x184] sm:$0xf0]  ;;  %v1092_v25 = vor.u32 %v1488_v15, %v1091_v14  ;;  %v1331_v26 = vld [vmem:[%s2333_s1 + $0x270] sm:$0xf]  ;;  %v1148_v36 = vor.u32 %v1502_v22, %v1147_v19 }
  0x16   :  { %696 = vmatpush.bf16.msra.mxu3 %v1236_v58  ;;  %v1548_v27 = vld [vmem:[%s2333_s1 + $0x274] sm:$0xf0]  ;;  %v1411_v28 = vld [vmem:[%s2333_s1 + $0x310] sm:$0xf]  ;;  %v1483_v30 = vld [vmem:[%s2333_s1 + $0x74] sm:$0xf]  ;;  %v1212_v37 = vor.u32 %v1518_v24, %v1211_v23 }
  0x17   :  { %670 = vmatpush.bf16.msra.mxu1 %v1108_v62  ;;  %v1568_v29 = vld [vmem:[%s2333_s1 + $0x314] sm:$0xf0]  ;;  %v1077_v31 = vld [vmem:[%s2333_s1 + $0x78] sm:$0xf0]  ;;  %v1083_v33 = vld [vmem:[%s2333_s1 + $0x80] sm:$0xf]  ;;  %v1332_v41 = vor.u32 %v1548_v27, %v1331_v26 }
  0x18   :  { %658 = vmatpush.bf16.msra.mxu0 %v1036_v4  ;;  %v1486_v34 = vld [vmem:[%s2333_s1 + $0x84] sm:$0xf0]  ;;  %v31_v35 = vld [vmem:[%s2334_s0 + $0x10] sm:$0xff]  ;;  %v1564_v39 = vld [vmem:[%s2333_s1 + $0x2f4] sm:$0xf0]  ;;  %v1412_v42 = vor.u32 %v1568_v29, %v1411_v28  ;;  %v1080_v46 = vor.u32 %v1483_v30, %v1077_v31  ;;  %vm1011_vm7 = vcmask 7168  }
  0x19   :  { %684 = vmatpush.bf16.msra.mxu2 %v1164_v5  ;;  %v1395_v38 = vld [vmem:[%s2333_s1 + $0x2f0] sm:$0xf]  ;;  %v1323_v40 = vld [vmem:[%s2333_s1 + $0x260] sm:$0xf]  ;;  %v1546_v43 = vld [vmem:[%s2333_s1 + $0x264] sm:$0xf0]  ;;  %v1084_v47 = vor.u32 %v1486_v34, %v1083_v33  ;;  %v1868_v51 = vpack.c.bf16 %v31_v35, %v31_v35 }
  0x1a   :  { %697 = vmatpush.bf16.msra.mxu3 %v1228_v6  ;;  %v1403_v44 = vld [vmem:[%s2333_s1 + $0x300] sm:$0xf]  ;;  %v1566_v48 = vld [vmem:[%s2333_s1 + $0x304] sm:$0xf0]  ;;  %v1481_v49 = vld [vmem:[%s2333_s1 + $0x64] sm:$0xf]  ;;  %v1396_v52 = vor.u32 %v1564_v39, %v1395_v38  ;;  %v1324_v60 = vor.u32 %v1546_v43, %v1323_v40 }
  0x1b   :  { %671 = vmatpush.bf16.msra.mxu1 %v1100_v10  ;;  %v29_v45 = vld [vmem:[%s2334_s0] sm:$0xff]  ;;  %v32_v50 = vld [vmem:[%s2334_s0 + $0x18] sm:$0xff]  ;;  %v1069_v53 = vld [vmem:[%s2333_s1 + $0x68] sm:$0xf0]  ;;  %v1404_v61 = vor.u32 %v1566_v48, %v1403_v44 }
  0x1c   :  { %659 = vmatpush.bf16.msra.mxu0 %v1028_v16  ;;  %v1499_v54 = vld [vmem:[%s2333_s1 + $0xf4] sm:$0xf]  ;;  %v1141_v55 = vld [vmem:[%s2333_s1 + $0xf8] sm:$0xf0]  ;;  %v1387_v56 = vld [vmem:[%s2333_s1 + $0x2e0] sm:$0xf]  ;;  %v1885_v58 = vpack.c.bf16 %v29_v45, %v29_v45  ;;  %v1887_v59 = vpack.c.bf16 %v32_v50, %v32_v50  ;;  %v1072_v63 = vor.u32 %v1481_v49, %v1069_v53 }
  0x1d   :  { %685 = vmatpush.bf16.msra.mxu2 %v1156_v20  ;;  %v1562_v57 = vld [vmem:[%s2333_s1 + $0x2e4] sm:$0xf0]  ;;  %v1144_v0 = vor.u32 %v1499_v54, %v1141_v55  ;;  %v1315_v1 = vld [vmem:[%s2333_s1 + $0x250] sm:$0xf]  ;;  %v1544_v2 = vld [vmem:[%s2333_s1 + $0x254] sm:$0xf0] }
  0x1e   :  { %698 = vmatpush.bf16.msra.mxu3 %v1220_v21  ;;  %v30_v62 = vld [vmem:[%s2334_s0 + $0x8] sm:$0xff]  ;;  %v1479_v3 = vld [vmem:[%s2333_s1 + $0x54] sm:$0xf]  ;;  %v1388_v4 = vor.u32 %v1562_v57, %v1387_v56  ;;  %v1061_v5 = vld [vmem:[%s2333_s1 + $0x58] sm:$0xf0]  ;;  %v1316_v11 = vor.u32 %v1544_v2, %v1315_v1 }
  0x1f   :  { %672 = vmatpush.bf16.msra.mxu1 %v1092_v25  ;;  %v1497_v6 = vld [vmem:[%s2333_s1 + $0xe4] sm:$0xf]  ;;  %v1133_v7 = vld [vmem:[%s2333_s1 + $0xe8] sm:$0xf0]  ;;  %v1379_v8 = vld [vmem:[%s2333_s1 + $0x2d0] sm:$0xf]  ;;  %v1919_v10 = vpack.c.bf16 %v30_v62, %v30_v62  ;;  %v1064_v12 = vor.u32 %v1479_v3, %v1061_v5 }
  0x20   :  { %660 = vmatpush.bf16.msra.mxu0 %v1020_v32  ;;  %v1560_v9 = vld [vmem:[%s2333_s1 + $0x2d4] sm:$0xf0]  ;;  %v1136_v13 = vor.u32 %v1497_v6, %v1133_v7  ;;  %v1307_v14 = vld [vmem:[%s2333_s1 + $0x240] sm:$0xf]  ;;  %v1542_v15 = vld [vmem:[%s2333_s1 + $0x244] sm:$0xf0] }
  0x21   :  { %686 = vmatpush.bf16.msra.mxu2 %v1148_v36  ;;  %v1477_v16 = vld [vmem:[%s2333_s1 + $0x44] sm:$0xf]  ;;  %v1380_v17 = vor.u32 %v1560_v9, %v1379_v8  ;;  %v1053_v18 = vld [vmem:[%s2333_s1 + $0x48] sm:$0xf0]  ;;  %v1495_v19 = vld [vmem:[%s2333_s1 + $0xd4] sm:$0xf]  ;;  %v1308_v23 = vor.u32 %v1542_v15, %v1307_v14 }
  0x22   :  { %699 = vmatpush.bf16.msra.mxu3 %v1212_v37  ;;  %v1125_v20 = vld [vmem:[%s2333_s1 + $0xd8] sm:$0xf0]  ;;  %v1371_v21 = vld [vmem:[%s2333_s1 + $0x2c0] sm:$0xf]  ;;  %v1558_v22 = vld [vmem:[%s2333_s1 + $0x2c4] sm:$0xf0]  ;;  %v1056_v24 = vor.u32 %v1477_v16, %v1053_v18 }
  0x23   :  { %673 = vmatpush.bf16.msra.mxu1 %v1084_v47  ;;  %661 = vmatmul.bf16.vlgmr.msra.gmra.mxu0 %v1885_v58  ;;  %v1128_v25 = vor.u32 %v1495_v19, %v1125_v20  ;;  %v1299_v26 = vld [vmem:[%s2333_s1 + $0x230] sm:$0xf]  ;;  %v1540_v27 = vld [vmem:[%s2333_s1 + $0x234] sm:$0xf0]  ;;  %v1475_v28 = vld [vmem:[%s2333_s1 + $0x34] sm:$0xf]  ;;  %v1372_v29 = vor.u32 %v1558_v22, %v1371_v21 }
  0x24   :  { %705 = vmatpush.bf16.msrb.mxu0 %v1332_v41  ;;  %687 = vmatmul.bf16.vlgmr.msra.gmra.mxu2 %v1868_v51  ;;  %v1045_v30 = vld [vmem:[%s2333_s1 + $0x38] sm:$0xf0]  ;;  %v1493_v31 = vld [vmem:[%s2333_s1 + $0xc4] sm:$0xf]  ;;  %v1117_v32 = vld [vmem:[%s2333_s1 + $0xc8] sm:$0xf0]  ;;  %v1300_v36 = vor.u32 %v1540_v27, %v1299_v26 }
  0x25   :  { %737 = vmatpush.bf16.msrb.mxu2 %v1412_v42  ;;  %700 = vmatmul.bf16.vlgmr.msra.gmra.mxu3 %v1887_v59  ;;  %v1363_v33 = vld [vmem:[%s2333_s1 + $0x2b0] sm:$0xf]  ;;  %v1556_v34 = vld [vmem:[%s2333_s1 + $0x2b4] sm:$0xf0]  ;;  %v1048_v37 = vor.u32 %v1475_v28, %v1045_v30  ;;  %v1120_v38 = vor.u32 %v1493_v31, %v1117_v32  ;;  %v1291_v39 = vld [vmem:[%s2333_s1 + $0x220] sm:$0xf] }
  0x26   :  { %744 = vmatpush.bf16.msrb.mxu3 %v1080_v46  ;;  %674 = vmatmul.bf16.vlgmr.msra.gmra.mxu1 %v1919_v10  ;;  %v35_v35 = vld [vmem:[%s2334_s0 + $0x30] sm:$0xff]  ;;  %v1538_v40 = vld [vmem:[%s2333_s1 + $0x224] sm:$0xf0]  ;;  %v1473_v41 = vld [vmem:[%s2333_s1 + $0x24] sm:$0xf]  ;;  %v1364_v42 = vor.u32 %v1556_v34, %v1363_v33 }
  0x27   :  { %718 = vmatpush.bf16.msrb.mxu1 %v1396_v52  ;;  %v1037_v43 = vld [vmem:[%s2333_s1 + $0x28] sm:$0xf0]  ;;  %v1491_v44 = vld [vmem:[%s2333_s1 + $0xb4] sm:$0xf]  ;;  %v1109_v45 = vld [vmem:[%s2333_s1 + $0xb8] sm:$0xf0]  ;;  %v1991_v46 = vpack.c.bf16 %v35_v35, %v35_v35  ;;  %v1292_v49 = vor.u32 %v1538_v40, %v1291_v39 }
  0x28   :  { %706 = vmatpush.bf16.msrb.mxu0 %v1324_v60  ;;  %v1355_v47 = vld [vmem:[%s2333_s1 + $0x2a0] sm:$0xf]  ;;  %v1554_v48 = vld [vmem:[%s2333_s1 + $0x2a4] sm:$0xf0]  ;;  %v1040_v50 = vor.u32 %v1473_v41, %v1037_v43  ;;  %v1112_v52 = vor.u32 %v1491_v44, %v1109_v45  ;;  %v1283_v53 = vld [vmem:[%s2333_s1 + $0x210] sm:$0xf] }
  0x29   :  { %738 = vmatpush.bf16.msrb.mxu2 %v1404_v61  ;;  %v1536_v54 = vld [vmem:[%s2333_s1 + $0x214] sm:$0xf0]  ;;  %v1471_v55 = vld [vmem:[%s2333_s1 + $0x14] sm:$0xf]  ;;  %v1356_v56 = vor.u32 %v1554_v48, %v1355_v47  ;;  %v1029_v57 = vld [vmem:[%s2333_s1 + $0x18] sm:$0xf0] }
  0x2a   :  { %745 = vmatpush.bf16.msrb.mxu3 %v1072_v63  ;;  %v1489_v60 = vld [vmem:[%s2333_s1 + $0xa4] sm:$0xf]  ;;  %v1101_v61 = vld [vmem:[%s2333_s1 + $0xa8] sm:$0xf0]  ;;  %v1347_v62 = vld [vmem:[%s2333_s1 + $0x290] sm:$0xf]  ;;  %v1032_v2 = vor.u32 %v1471_v55, %v1029_v57 }
  0x2b   :  { %719 = vmatpush.bf16.msrb.mxu1 %v1388_v4  ;;  %v1552_v63 = vld [vmem:[%s2333_s1 + $0x294] sm:$0xf0]  ;;  %v1275_v1 = vld [vmem:[%s2333_s1 + $0x200] sm:$0xf]  ;;  %v1104_v3 = vor.u32 %v1489_v60, %v1101_v61  ;;  %v1534_v4 = vld [vmem:[%s2333_s1 + $0x204] sm:$0xf0] }
  0x2c   :  { %707 = vmatpush.bf16.msrb.mxu0 %v1316_v11  ;;  %v1469_v5 = vld [vmem:[%s2333_s1 + $0x4] sm:$0xf]  ;;  %v1021_v6 = vld [vmem:[%s2333_s1 + $0x8] sm:$0xf0]  ;;  %v1348_v7 = vor.u32 %v1552_v63, %v1347_v62  ;;  %v1487_v8 = vld [vmem:[%s2333_s1 + $0x94] sm:$0xf]  ;;  %v1276_v15 = vor.u32 %v1534_v4, %v1275_v1 }
  0x2d   :  { %757 = vmatpush.bf16.msra.mxu2 %v1144_v0  ;;  %v1284_v0 = vor.u32 %v1536_v54, %v1283_v53  ;;  %v1093_v9 = vld [vmem:[%s2333_s1 + $0x98] sm:$0xf0]  ;;  %v1515_v11 = vld [vmem:[%s2333_s1 + $0x174] sm:$0xf]  ;;  %v1339_v16 = vld [vmem:[%s2333_s1 + $0x280] sm:$0xf]  ;;  %v1024_v19 = vor.u32 %v1469_v5, %v1021_v6 }
  0x2e   :  { %746 = vmatpush.bf16.msrb.mxu3 %v1064_v12  ;;  %v1205_v12 = vld [vmem:[%s2333_s1 + $0x178] sm:$0xf0]  ;;  %v33_v18 = vld [vmem:[%s2334_s0 + $0x20] sm:$0xff]  ;;  %v1096_v20 = vor.u32 %v1487_v8, %v1093_v9  ;;  %v1531_v21 = vld [vmem:[%s2333_s1 + $0x1f4] sm:$0xf] }
  0x2f   :  { %720 = vmatpush.bf16.msrb.mxu1 %v1380_v17  ;;  %v1333_v14 = vld [vmem:[%s2333_s1 + $0x278] sm:$0xf0]  ;;  %v1550_v17 = vld [vmem:[%s2333_s1 + $0x284] sm:$0xf0]  ;;  %v1485_v26 = vld [vmem:[%s2333_s1 + $0x84] sm:$0xf] }
  0x30   :  { %708 = vmatpush.bf16.msrb.mxu0 %v1308_v23  ;;  %v1269_v22 = vld [vmem:[%s2333_s1 + $0x1f8] sm:$0xf0]  ;;  %v1208_v23 = vor.u32 %v1515_v11, %v1205_v12  ;;  %v1085_v27 = vld [vmem:[%s2333_s1 + $0x88] sm:$0xf0]  ;;  %v1340_v28 = vor.u32 %v1550_v17, %v1339_v16  ;;  %v1513_v30 = vld [vmem:[%s2333_s1 + $0x164] sm:$0xf] }
  0x31   :  { %758 = vmatpush.bf16.msra.mxu2 %v1136_v13  ;;  %v1547_v13 = vld [vmem:[%s2333_s1 + $0x274] sm:$0xf]  ;;  %v1197_v31 = vld [vmem:[%s2333_s1 + $0x168] sm:$0xf0]  ;;  %v1545_v32 = vld [vmem:[%s2333_s1 + $0x264] sm:$0xf]  ;;  %v1272_v33 = vor.u32 %v1531_v21, %v1269_v22 }
  0x32   :  { %747 = vmatpush.bf16.msrb.mxu3 %v1056_v24  ;;  %v1336_v24 = vor.u32 %v1547_v13, %v1333_v14  ;;  %v1325_v34 = vld [vmem:[%s2333_s1 + $0x268] sm:$0xf0]  ;;  %v1563_v35 = vld [vmem:[%s2333_s1 + $0x2f4] sm:$0xf]  ;;  %v1200_v41 = vor.u32 %v1513_v30, %v1197_v31  ;;  %v1189_v45 = vld [vmem:[%s2333_s1 + $0x158] sm:$0xf0] }
  0x33   :  { %721 = vmatpush.bf16.msrb.mxu1 %v1372_v29  ;;  %v2079_v29 = vpack.c.bf16 %v33_v18, %v33_v18  ;;  %v1261_v39 = vld [vmem:[%s2333_s1 + $0x1e8] sm:$0xf0]  ;;  %v1511_v44 = vld [vmem:[%s2333_s1 + $0x154] sm:$0xf]  ;;  %v1253_v54 = vld [vmem:[%s2333_s1 + $0x1d8] sm:$0xf0] }
  0x34   :  { %709 = vmatpush.bf16.msrb.mxu0 %v1300_v36  ;;  %1417 = vmatmul.msk.bf16.vlgmr.msrb.gmra.mxu2 %vm649_vm0, %v1991_v46  ;;  %v1397_v36 = vld [vmem:[%s2333_s1 + $0x2f8] sm:$0xf0]  ;;  %v1543_v47 = vld [vmem:[%s2333_s1 + $0x254] sm:$0xf]  ;;  %v1192_v55 = vor.u32 %v1511_v44, %v1189_v45  ;;  %v1181_v60 = vld [vmem:[%s2333_s1 + $0x148] sm:$0xf0] }
  0x35   :  { %759 = vmatpush.bf16.msra.mxu2 %v1128_v25  ;;  %v34_v25 = vld [vmem:[%s2334_s0 + $0x28] sm:$0xff]  ;;  %v1400_v43 = vor.u32 %v1563_v35, %v1397_v36  ;;  %v1527_v53 = vld [vmem:[%s2333_s1 + $0x1d4] sm:$0xf]  ;;  %v1541_v61 = vld [vmem:[%s2333_s1 + $0x244] sm:$0xf] }
  0x36   :  { %748 = vmatpush.bf16.msrb.mxu3 %v1048_v37  ;;  %v1088_v37 = vor.u32 %v1485_v26, %v1085_v27  ;;  %v2105_v40 = vpack.c.bf16 %v34_v25, %v34_v25  ;;  %v1256_v62 = vor.u32 %v1527_v53, %v1253_v54  ;;  %v1309_v63 = vld [vmem:[%s2333_s1 + $0x248] sm:$0xf0]  ;;  %v1381_v1 = vld [vmem:[%s2333_s1 + $0x2d8] sm:$0xf0]  ;;  %v1539_v8 = vld [vmem:[%s2333_s1 + $0x234] sm:$0xf] }
  0x37   :  { %722 = vmatpush.bf16.msrb.mxu1 %v1364_v42  ;;  %v1328_v42 = vor.u32 %v1545_v32, %v1325_v34  ;;  %v1312_v5 = vor.u32 %v1541_v61, %v1309_v63  ;;  %v1301_v11 = vld [vmem:[%s2333_s1 + $0x238] sm:$0xf0]  ;;  %v1557_v12 = vld [vmem:[%s2333_s1 + $0x2c4] sm:$0xf]  ;;  %v1373_v13 = vld [vmem:[%s2333_s1 + $0x2c8] sm:$0xf0] }
  0x38   :  { %710 = vmatpush.bf16.msrb.mxu0 %v1292_v49  ;;  %v1317_v49 = vld [vmem:[%s2333_s1 + $0x258] sm:$0xf0]  ;;  %v1523_v14 = vld [vmem:[%s2333_s1 + $0x1b4] sm:$0xf]  ;;  %v1304_v17 = vor.u32 %v1539_v8, %v1301_v11  ;;  %v1376_v18 = vor.u32 %v1557_v12, %v1373_v13  ;;  %v1537_v21 = vld [vmem:[%s2333_s1 + $0x224] sm:$0xf] }
  0x39   :  { %760 = vmatpush.bf16.msra.mxu2 %v1120_v38  ;;  %v1529_v38 = vld [vmem:[%s2333_s1 + $0x1e4] sm:$0xf]  ;;  %v1365_v25 = vld [vmem:[%s2333_s1 + $0x2b8] sm:$0xf0]  ;;  %v1229_v27 = vld [vmem:[%s2333_s1 + $0x1a8] sm:$0xf0] }
  0x3a   :  { %749 = vmatpush.bf16.msrb.mxu3 %v1040_v50  ;;  %v1264_v48 = vor.u32 %v1529_v38, %v1261_v39  ;;  %v1561_v50 = vld [vmem:[%s2333_s1 + $0x2e4] sm:$0xf]  ;;  %v1503_v32 = vld [vmem:[%s2333_s1 + $0x114] sm:$0xf]  ;;  %v1285_v36 = vld [vmem:[%s2333_s1 + $0x218] sm:$0xf0] }
  0x3b   :  { %723 = vmatpush.bf16.msrb.mxu1 %v1356_v56  ;;  %v1320_v56 = vor.u32 %v1543_v47, %v1317_v49  ;;  %v1521_v26 = vld [vmem:[%s2333_s1 + $0x1a4] sm:$0xf]  ;;  %v1535_v34 = vld [vmem:[%s2333_s1 + $0x214] sm:$0xf]  ;;  %v1357_v38 = vld [vmem:[%s2333_s1 + $0x2a8] sm:$0xf0] }
  0x3c   :  { %711 = vmatpush.bf16.msrb.mxu0 %v1284_v0  ;;  %v1559_v0 = vld [vmem:[%s2333_s1 + $0x2d4] sm:$0xf]  ;;  %v1232_v35 = vor.u32 %v1521_v26, %v1229_v27  ;;  %v1288_v44 = vor.u32 %v1535_v34, %v1285_v36  ;;  %v1149_v47 = vld [vmem:[%s2333_s1 + $0x108] sm:$0xf0]  ;;  %v1349_v53 = vld [vmem:[%s2333_s1 + $0x298] sm:$0xf0] }
  0x3d   :  { %761 = vmatpush.bf16.msra.mxu2 %v1112_v52  ;;  %v1389_v52 = vld [vmem:[%s2333_s1 + $0x2e8] sm:$0xf0]  ;;  %v1384_v6 = vor.u32 %v1559_v0, %v1381_v1  ;;  %v1519_v39 = vld [vmem:[%s2333_s1 + $0x194] sm:$0xf]  ;;  %v1517_v54 = vld [vmem:[%s2333_s1 + $0x184] sm:$0xf] }
  0x3e   :  { %750 = vmatpush.bf16.msrb.mxu3 %v1032_v2  ;;  %v1392_v57 = vor.u32 %v1561_v50, %v1389_v52  ;;  %v1525_v2 = vld [vmem:[%s2333_s1 + $0x1c4] sm:$0xf]  ;;  %v1277_v49 = vld [vmem:[%s2333_s1 + $0x208] sm:$0xf0]  ;;  %v1551_v52 = vld [vmem:[%s2333_s1 + $0x294] sm:$0xf] }
  0x3f   :  { %724 = vmatpush.bf16.msrb.mxu1 %v1348_v7  ;;  %v1507_v7 = vld [vmem:[%s2333_s1 + $0x134] sm:$0xf]  ;;  %v1352_v61 = vor.u32 %v1551_v52, %v1349_v53  ;;  %v1549_v0 = vld [vmem:[%s2333_s1 + $0x284] sm:$0xf]  ;;  %v1341_v1 = vld [vmem:[%s2333_s1 + $0x288] sm:$0xf0] }
  0x40   :  { %712 = vmatpush.bf16.msrb.mxu0 %v1276_v15  ;;  %v1237_v15 = vld [vmem:[%s2333_s1 + $0x1b8] sm:$0xf0]  ;;  %v143_v13 = vld [vmem:[%s2337_s2] sm:$0x3] }
  0x41   :  { %762 = vmatpush.bf16.msra.mxu2 %v1104_v3  ;;  %v1245_v3 = vld [vmem:[%s2333_s1 + $0x1c8] sm:$0xf0]  ;;  %v1240_v22 = vor.u32 %v1523_v14, %v1237_v15  ;;  %v145_v15 = vperm.slane %v143_v13, 0  ;;  %v1580_v34 = vld [vmem:[%s2336_s3 + $0x58] sm:$0xff] }
  0x42   :  { %751 = vmatpush.bf16.msrb.mxu3 %v1024_v19  ;;  %v1248_v9 = vor.u32 %v1525_v2, %v1245_v3  ;;  %v1505_v19 = vld [vmem:[%s2333_s1 + $0x124] sm:$0xf]  ;;  %v1405_v3 = vld [vmem:[%s2333_s1 + $0x308] sm:$0xf0] }
  0x43   :  { %725 = vmatpush.bf16.msrb.mxu1 %v1340_v28  ;;  %713 = vmatmul.bf16.vlgmr.msrb.gmra.mxu0 %v2079_v29  ;;  %v1565_v2 = vld [vmem:[%s2333_s1 + $0x304] sm:$0xf] }
  0x44   :  { %770 = vmatpush.bf16.msra.mxu0 %v1208_v23  ;;  %v1293_v23 = vld [vmem:[%s2333_s1 + $0x228] sm:$0xf0] }
  0x45   :  { %763 = vmatpush.bf16.msra.mxu2 %v1096_v20  ;;  %752 = vmatmul.bf16.vlgmr.msrb.gmra.mxu3 %v1885_v58  ;;  %v1509_v58 = vld [vmem:[%s2333_s1 + $0x144] sm:$0xf]  ;;  %v1165_v20 = vld [vmem:[%s2333_s1 + $0x128] sm:$0xf0]  ;;  %v1296_v30 = vor.u32 %v1537_v21, %v1293_v23  ;;  %v863_v23 = vld [vmem:[%s2336_s3 + $0x60] sm:$0xf] }
  0x46   :  { %796 = vmatpush.bf16.msra.mxu3 %v1336_v24  ;;  %726 = vmatmul.bf16.vlgmr.msrb.gmra.mxu1 %v2105_v40  ;;  %v1184_v4 = vor.u32 %v1509_v58, %v1181_v60  ;;  %v1555_v24 = vld [vmem:[%s2333_s1 + $0x2b4] sm:$0xf]  ;;  %v1168_v28 = vor.u32 %v1505_v19, %v1165_v20 }
  0x47   :  { %783 = vmatpush.bf16.msra.mxu1 %v1272_v33  ;;  %v1368_v31 = vor.u32 %v1555_v24, %v1365_v25  ;;  %v1157_v33 = vld [vmem:[%s2333_s1 + $0x118] sm:$0xf0]  ;;  %v917_v24 = vunpack.c.l.b16 %v863_v23 }
  0x48   :  { %771 = vmatpush.bf16.msra.mxu0 %v1200_v41  ;;  %v1221_v41 = vld [vmem:[%s2333_s1 + $0x198] sm:$0xf0] }
  0x49   :  { %764 = vmatpush.bf16.msra.mxu2 %v1088_v37  ;;  %v1553_v37 = vld [vmem:[%s2333_s1 + $0x2a4] sm:$0xf]  ;;  %v1224_v50 = vor.u32 %v1519_v39, %v1221_v41  ;;  %v930_v27 = vpack.c.b16 %v917_v24, %v917_v24  ;;  %v1579_v39 = vld [vmem:[%s2336_s3 + $0x50] sm:$0xff] }
  0x4a   :  { %797 = vmatpush.bf16.msra.mxu3 %v1328_v42  ;;  %v1160_v42 = vor.u32 %v1503_v32, %v1157_v33  ;;  %v1360_v45 = vor.u32 %v1553_v37, %v1357_v38 }
  0x4b   :  { %784 = vmatpush.bf16.msra.mxu1 %v1264_v48  ;;  %v1533_v48 = vld [vmem:[%s2333_s1 + $0x204] sm:$0xf] }
  0x4c   :  { %765 = vmatmul.bf16.vlgmr.msra.gmra.mxu2 %v1919_v10  ;;  %772 = vmatpush.bf16.msra.mxu0 %v1192_v55  ;;  %v1173_v10 = vld [vmem:[%s2333_s1 + $0x138] sm:$0xf0]  ;;  %v1213_v55 = vld [vmem:[%s2333_s1 + $0x188] sm:$0xf0]  ;;  %v1280_v60 = vor.u32 %v1533_v48, %v1277_v49  ;;  %v146_v49 = vperm.slane %v143_v13, 1 }
  0x4d   :  { %809 = vmatpush.bf16.msrb.mxu2 %v1400_v43  ;;  %v1176_v16 = vor.u32 %v1507_v7, %v1173_v10  ;;  %v1501_v43 = vld [vmem:[%s2333_s1 + $0x104] sm:$0xf]  ;;  %v1570_v10 = vld [vmem:[%s2336_s3 + $0x8] sm:$0xff] }
  0x4e   :  { %798 = vmatpush.bf16.msra.mxu3 %v1320_v56  ;;  %v1567_v56 = vld [vmem:[%s2333_s1 + $0x314] sm:$0xf]  ;;  %v1152_v58 = vor.u32 %v1501_v43, %v1149_v47  ;;  %v1577_v47 = vld [vmem:[%s2336_s3 + $0x40] sm:$0xff] }
  0x4f   :  { %785 = vmatpush.bf16.msra.mxu1 %v1256_v62  ;;  %v1216_v62 = vor.u32 %v1517_v54, %v1213_v55 }
  0x50   :  { %773 = vmatpush.bf16.msra.mxu0 %v1184_v4  ;;  %v1344_v4 = vor.u32 %v1549_v0, %v1341_v1 }
  0x51   :  { %810 = vmatpush.bf16.msrb.mxu2 %v1392_v57  ;;  %v1413_v57 = vld [vmem:[%s2333_s1 + $0x318] sm:$0xf0] }
  0x52   :  { %799 = vmatpush.bf16.msra.mxu3 %v1312_v5  ;;  %v1416_v63 = vor.u32 %v1567_v56, %v1413_v57  ;;  %v1408_v5 = vor.u32 %v1565_v2, %v1405_v3 }
  0x53   :  { %786 = vmatpush.bf16.msra.mxu1 %v1248_v9  ;;  %v1569_v9 = vld [vmem:[%s2336_s3] sm:$0xff] }
  0x54   :  { %774 = vmatpush.bf16.msra.mxu0 %v1176_v16 }
  0x55   :  { %811 = vmatpush.bf16.msrb.mxu2 %v1384_v6  ;;  %v1576_v6 = vld [vmem:[%s2336_s3 + $0x38] sm:$0xff] }
  0x56   :  { %800 = vmatpush.bf16.msra.mxu3 %v1304_v17 }
  0x57   :  { %787 = vmatpush.bf16.msra.mxu1 %v1240_v22 }
  0x58   :  { %775 = vmatpush.bf16.msra.mxu0 %v1168_v28 }
  0x59   :  { %812 = vmatpush.bf16.msrb.mxu2 %v1376_v18 }
  0x5a   :  { %801 = vmatpush.bf16.msra.mxu3 %v1296_v30 }
  0x5b   :  { %788 = vmatpush.bf16.msra.mxu1 %v1232_v35 }
  0x5c   :  { %776 = vmatpush.bf16.msra.mxu0 %v1160_v42 }
  0x5d   :  { %813 = vmatpush.bf16.msrb.mxu2 %v1368_v31  ;;  %v949_v31 = vsel %vm947_vm1, %v930_v27, 0 }
  0x5e   :  { %802 = vmatpush.bf16.msra.mxu3 %v1288_v44  ;;  %v1578_v44 = vld [vmem:[%s2336_s3 + $0x48] sm:$0xff] }
  0x5f   :  { %789 = vmatpush.bf16.msra.mxu1 %v1224_v50 }
  0x60   :  { %777 = vmatpush.bf16.msra.mxu0 %v1152_v58 }
  0x61   :  { %814 = vmatpush.bf16.msrb.mxu2 %v1360_v45 }
  0x62   :  { %803 = vmatpush.bf16.msra.mxu3 %v1280_v60 }
  0x63   :  { %790 = vmatpush.bf16.msra.mxu1 %v1216_v62  ;;  %778 = vmatmul.bf16.vlgmr.msra.gmra.mxu0 %v1868_v51  ;;  %v1575_v51 = vld [vmem:[%s2336_s3 + $0x30] sm:$0xff] }
  0x64   :  { %828 = vmatpush.bf16.msrb.mxu0 %v1416_v63 }
  0x65   :  { %815 = vmatpush.bf16.msrb.mxu2 %v1352_v61  ;;  %804 = vmatmul.bf16.vlgmr.msra.gmra.mxu3 %v2079_v29  ;;  %v1573_v29 = vld [vmem:[%s2336_s3 + $0x20] sm:$0xff] }
  0x66   :  { %791 = vmatmul.bf16.vlgmr.msra.gmra.mxu1 %v1887_v59  ;;  %v1574_v59 = vld [vmem:[%s2336_s3 + $0x28] sm:$0xff]  ;;  %967 = vmatpush.bf16.msrb.mxu3 %v949_v31 }
  0x67   :  { %951 = vmatpush.bf16.msrb.mxu1 %v1576_v6 }
  0x68   :  { %829 = vmatpush.bf16.msrb.mxu0 %v1408_v5 }
  0x69   :  { %816 = vmatpush.bf16.msrb.mxu2 %v1344_v4 }
  0x6a   :  { %968 = vmatpush.bf16.msrb.mxu3 %v1580_v34 }
  0x6b   :  { %952 = vmatpush.bf16.msrb.mxu1 %v1575_v51 }
  0x6c   :  { %817 = vmatmul.bf16.vlgmr.msrb.gmra.mxu2 %v2105_v40  ;;  %v1571_v40 = vld [vmem:[%s2336_s3 + $0x10] sm:$0xff] }
  0x6e   :  { %969 = vmatpush.bf16.msrb.mxu3 %v1579_v39 }
  0x6f   :  { %953 = vmatpush.bf16.msrb.mxu1 %v1574_v59 }
  0x72   :  { %970 = vmatpush.bf16.msrb.mxu3 %v1578_v44 }
  0x73   :  { %1418 = vmatmul.msk.bf16.vlgmr.msrb.gmra.mxu0 %vm649_vm0, %v1991_v46  ;;  %954 = vmatpush.bf16.msrb.mxu1 %v1573_v29  ;;  %v1572_v46 = vld [vmem:[%s2336_s3 + $0x18] sm:$0xff]  ;;  %v12_v29 = vstv %s2339_s6 }
  0x74   :  { %13 = vst [vmem:[#allocation2] sm:$0x1] %v12_v29 }
  0x76   :  { %971 = vmatpush.bf16.msrb.mxu3 %v1577_v47 }
  0x77   :  { %955 = vmatpush.bf16.msrb.mxu1 %v1572_v46  ;;  %v1581_v46 = vld [vmem:[%s2335_s4] ss:$0 sm:$0xff] }
  0x7b   :  { %956 = vmatpush.bf16.msrb.mxu1 %v1571_v40 }
  0x7f   :  { %957 = vmatpush.bf16.msrb.mxu1 %v1570_v10 }
  0x83   :  { %958 = vmatpush.bf16.msrb.mxu1 %v1569_v9 }
  0xa0   :  { %v662_v7 = vpop.f32.mrf.mxu0 }
  0xa1   :  { %v663_v19 = vadd.f32 %v662_v7, %v145_v15 }
  0xa3   :  { %v675_v8 = vpop.f32.mrf.mxu1 }
  0xa4   :  { %v676_v20 = vadd.f32 %v675_v8, %v663_v19  ;;  %v1582_v8 = vld [vmem:[%s2338_s5] ss:$0 sm:$0xff] }
  0xa7   :  { %v688_v11 = vpop.f32.mrf.mxu2 }
  0xa8   :  { %v701_v12 = vpop.f32.mrf.mxu3  ;;  %v664_v14 = vpop.f32.mrf.mxu0  ;;  %v689_v22 = vadd.f32 %v688_v11, %v676_v20 }
  0xa9   :  { %v1583_v14 = vld [vmem:[#allocation2] ss:$0 sm:$0xff] }
  0xaa   :  { %v702_v25 = vadd.f32 %v701_v12, %v689_v22 }
  0xab   :  { %v677_v16 = vpop.f32.mrf.mxu1 }
  0xaf   :  { %v690_v17 = vpop.f32.mrf.mxu2 }
  0xb0   :  { %v703_v18 = vpop.f32.mrf.mxu3 }
  0xb7   :  { %v740_v21 = vpop.f32.mrf.mxu2 }
  0xbf   :  { %v742_v30 = vpop.f32.mrf.mxu2 }
  0xc0   :  { %v714_v26 = vpop.f32.mrf.mxu0 }
  0xc1   :  { %v715_v28 = vadd.f32 %v714_v26, %v702_v25 }
  0xc3   :  { %v727_v32 = vpop.f32.mrf.mxu1 }
  0xc4   :  { %v728_v33 = vadd.f32 %v727_v32, %v715_v28 }
  0xc6   :  { %v741_v35 = vadd.f32 %v740_v21, %v728_v33 }
  0xc8   :  { %v753_v36 = vpop.f32.mrf.mxu3  ;;  %v835_v37 = vmax.f32 %v741_v35, 0.0  ;;  %v716_v38 = vpop.f32.mrf.mxu0 }
  0xc9   :  { %v754_v50 = vadd.f32 %v753_v36, %v146_v49 }
  0xca   :  { %v837_v41 = vpack.c.bf16 %v835_v37, %v835_v37 }
  0xcb   :  { %v729_v43 = vpop.f32.mrf.mxu1 }
  0xcc   :  { %959 = vmatmul.bf16.vlgmr.msrb.gmra.mxu1 %v837_v41 }
  0xcf   :  { %v766_v42 = vpop.f32.mrf.mxu2 }
  0xd0   :  { %v755_v45 = vpop.f32.mrf.mxu3  ;;  %v767_v54 = vadd.f32 %v766_v42, %v754_v50 }
  0xd7   :  { %v768_v48 = vpop.f32.mrf.mxu2 }
  0xe0   :  { %v779_v52 = vpop.f32.mrf.mxu0 }
  0xe1   :  { %v780_v55 = vadd.f32 %v779_v52, %v767_v54 }
  0xe3   :  { %v792_v53 = vpop.f32.mrf.mxu1 }
  0xe4   :  { %v793_v60 = vadd.f32 %v792_v53, %v780_v55 }
  0xe8   :  { %v805_v56 = vpop.f32.mrf.mxu3  ;;  %v781_v57 = vpop.f32.mrf.mxu0 }
  0xe9   :  { %v806_v62 = vadd.f32 %v805_v56, %v793_v60 }
  0xeb   :  { %v794_v58 = vpop.f32.mrf.mxu1 }
  0xef   :  { %v818_v61 = vpop.f32.mrf.mxu2 }
  0xf0   :  { %v819_v63 = vadd.f32 %v818_v61, %v806_v62  ;;  %v807_v0 = vpop.f32.mrf.mxu3  ;;  %v831_v1 = vpop.f32.mrf.mxu0 }
  0xf2   :  { %v832_v2 = vadd.f32 %v831_v1, %v819_v63 }
  0xf4   :  { %v836_v3 = vmax.f32 %v832_v2, 0.0 }
  0xf6   :  { %v838_v5 = vpack.c.bf16 %v836_v3, %v836_v3 }
  0xf7   :  { %v820_v4 = vpop.f32.mrf.mxu2 }
  0xf8   :  { %1467 = vmatmul.msk.bf16.vlgmr.msrb.gmra.mxu3 %vm943_vm2, %v838_v5  ;;  %v833_v6 = vpop.f32.mrf.mxu0 }
 0x149   :  { %v960_v51 = vpop.f32.mrf.mxu1 }
 0x14a   :  { %v961_v40 = vadd.f32 %v1581_v46, %v960_v51 }
 0x151   :  { %v962_v59 = vpop.f32.mrf.mxu1 }
 0x17b   :  { %v973_v7 = vpop.f32.mrf.mxu3 }
 0x17c   :  { %v974_v10 = vadd.f32 %v973_v7, %v961_v40 }
 0x17e   :  { %v977_v9 = vmax.f32 %v974_v10, 0.0 }
 0x180   :  { %v982_v11 = vmul.f32 %v1582_v8, %v977_v9 }
 0x182   :  { %v984_v12 = vsel %vm983_vm3, %v982_v11, 0.0 }
 0x183   :  { %v975_v13 = vpop.f32.mrf.mxu3  ;;  %985 = vadd.xlane.f32.xlu0 %v984_v12 }
 0x1f6   :  { %v986_v15 = vpop.xlane.xlu0 %985 }
 0x1f7   :  { %v991_v16 = vadd.f32 %v1583_v14, %v986_v15 }
 0x1f9   :  { %v1468_v17 = vmul.f32 -1.442695, %v991_v16 }
 0x1fb   :  { %1584 = vpow2.f32 %v1468_v17 }
 0x201   :  { %v1585_v18 = vpop.eup %1584 }
 0x202   :  { %v995_v19 = vadd.f32 1.0, %v1585_v18 }
 0x204   :  { %1586 = vrcp.f32 %v995_v19  ;;  %v1007_v23 = vand.u32 2147483648, %v995_v19  ;;  %v1005_v25 = vand.u32 2147483647, %v995_v19  ;;  %vm1001_vm5 = vweird.f32 %v995_v19 }
 0x206   :  { %v1008_v27 = vor.u32 1.1754944e-38, %v1007_v23  ;;  %vm1006_vm8 = vcmp.eq.f32.partialorder %v1005_v25, 8.507059e+37 }
 0x20a   :  { %v1587_v20 = vpop.eup %1586 }
 0x20b   :  { %v997_v21 = vmul.f32 %v1587_v20, %v995_v19  ;;  %vm1002_vm4 = vweird.f32 %v1587_v20 }
 0x20c   :  { %vm1003_vm6 = vmor %vm1001_vm5, %vm1002_vm4 }
 0x20d   :  { %v998_v22 = vsub.f32 1.0, %v997_v21 }
 0x20f   :  { %v999_v24 = vmul.f32 %v1587_v20, %v998_v22 }
 0x211   :  { %v1000_v26 = vadd.f32 %v1587_v20, %v999_v24 }
 0x213   :  { %v1004_v28 = vsel %vm1003_vm6, %v1587_v20, %v1000_v26 }
 0x214   :  { %v1009_v30 = vsel %vm1006_vm8, %v1008_v27, %v1004_v28 }
 0x215   :  { %1012 = vst.msk [vmem:[%s2340_s7] sm:$0xff] %vm1011_vm7, %v1009_v30 }

</bundles_post_ra>
